<compile_context>
chip_gen: v5e
topology: v5e:2x2
jax: 0.10.0
libtpu: 0.0.40
codegen_flags: <defaults>
</compile_context>

<pallas_src>
import functools

import jax
import jax.numpy as jnp
from jax.experimental import pallas as pl
from jax.experimental.pallas import tpu as pltpu


def _round_up(x: int, m: int) -> int:
    return ((x + m - 1) // m) * m


def _selector_dot(x, sel):
    """x @ sel, exact(ish) for a 0/1 selector `sel` held in bf16.

    x (f32) is split into hi + lo bf16 parts; every bf16 product against 0/1
    is exact and the MXU accumulates in f32, so the result matches an f32
    reduction to ~1e-6 regardless of the backend's default f32-matmul path.
    """
    hi = x.astype(jnp.bfloat16)
    lo = (x - hi.astype(jnp.float32)).astype(jnp.bfloat16)
    out = jnp.dot(hi, sel, preferred_element_type=jnp.float32)
    return out + jnp.dot(lo, sel, preferred_element_type=jnp.float32)


def _planar_flow_kernel(scal_ref, z_ref, w_ref, u_ref, bdiag_ref, pick_ref,
                        y_ref, ld_ref, *, epsilon, num_layers):
    """All planar layers fused over one packed row tile.

    scal_ref : SMEM [L, 2]      (b, <u_hat, w>) per layer
    z_ref    : [TM, LANES]      P = LANES // dim feature rows packed per row
    w_ref    : [L, LANES]       w tiled P times across lanes
    u_ref    : [L, LANES]       u_hat tiled P times across lanes
    bdiag_ref: [LANES, LANES]   0/1 "same segment" block-diagonal matrix (bf16)
    pick_ref : [LANES, P]       one-hot column per segment (lane p*dim), bf16
    y_ref    : [TM, LANES]
    ld_ref   : [TM, P]          summed log|det| per original row
    """
    z = z_ref[...].astype(jnp.float32)
    bdiag = bdiag_ref[...]
    pick = pick_ref[...]
    w_all = w_ref[...]
    u_all = u_ref[...]

    if num_layers == 0:
        y_ref[...] = z.astype(y_ref.dtype)
        ld_ref[...] = jnp.zeros(ld_ref.shape, jnp.float32)
        return

    prod = None
    for l in range(num_layers):
        w = w_all[l:l + 1, :]                      # [1, LANES]
        u = u_all[l:l + 1, :]
        b = scal_ref[l, 0]
        uw = scal_ref[l, 1]                        # hoisted <u_hat, w>

        # One block-diagonal matmul on the MXU gives the per-segment dot
        # product already replicated on every lane of its segment, so tanh /
        # update / det all run directly on full-lane vregs (no broadcast dot).
        s = _selector_dot(z * w, bdiag) + b        # [TM, LANES]
        a = jnp.tanh(s)                            # replicated per segment
        z = z + u * a
        fac = epsilon + jnp.abs(1.0 + (1.0 - a * a) * uw)
        prod = fac if prod is None else prod * fac

    y_ref[...] = z.astype(y_ref.dtype)
    # Single log of the running |det| product; then pick one lane per segment
    # (all lanes of a segment hold identical values) via an exact 0/1 matmul.
    ld_full = jnp.log(prod)                        # [TM, LANES]
    ld_ref[...] = _selector_dot(ld_full, pick)     # [TM, P]


def planar_flow(z, ws, bs, us, epsilon=1e-4, block_rows=2048):
    """Pallas TPU forward pass of PlanarFlow (stacked PlanarTransforms).

    z  : [..., dim]     (f32 or bf16; math is f32, I/O streams in z.dtype)
    ws : [L, dim], bs : [L], us : [L, dim]
    Returns (y [..., dim], summed log_det [...]).
    """
    num_layers, dim = ws.shape
    lead_shape = z.shape[:-1]
    f32 = jnp.float32

    # --- get_u_hat conditioning + hoisted <u_hat, w> (scalar-sized JAX glue) --
    # TODO(synk): get_u_hat mutates self.u.data in-place in PyTorch; here it is
    # computed functionally every call (same forward result, no side effect).
    ws32 = ws.astype(f32)
    us32 = us.astype(f32)
    wtu = jnp.sum(ws32 * us32, axis=-1)                               # [L]
    m_wtu = -1.0 + jax.nn.softplus(wtu)
    w_sq = jnp.sum(ws32 * ws32, axis=-1)
    u_hat = jnp.where((wtu >= -1.0)[:, None], us32,
                      us32 + ((m_wtu - wtu) / w_sq)[:, None] * ws32)  # [L, dim]
    uw = jnp.sum(u_hat * ws32, axis=-1)                               # [L]
    scal = jnp.stack([bs.astype(f32).reshape(num_layers), uw], axis=-1)  # [L, 2]

    # --- lane-dense packing: P = 128 // dim rows per 128-lane register row ---
    pack = 128 // dim if (dim <= 128 and 128 % dim == 0) else 1
    lanes = pack * dim

    w_tiled = jnp.tile(ws32, (1, pack))                               # [L, lanes]
    u_tiled = jnp.tile(u_hat, (1, pack))
    seg = jnp.arange(lanes, dtype=jnp.int32) // dim
    bdiag = (seg[:, None] == seg[None, :]).astype(jnp.bfloat16)       # [lanes, lanes]
    pick = (jnp.arange(lanes, dtype=jnp.int32)[:, None]
            == (jnp.arange(pack, dtype=jnp.int32) * dim)[None, :]
            ).astype(jnp.bfloat16)                                    # [lanes, pack]

    z2d = z.reshape(-1, dim)
    n = z2d.shape[0]
    # Only pad to a multiple of `pack` (needed for the lane-packing reshape);
    # ragged row tiles are handled by Pallas partial-block masking, so no
    # full-array pad up to the tile size.
    n_eff = _round_up(n, pack)
    if n_eff != n:
        z2d = jnp.pad(z2d, ((0, n_eff - n), (0, 0)))
    n_pk = n_eff // pack
    z_packed = z2d.reshape(n_pk, lanes)

    # Row-tile size: as large as block_rows allows, but keep >= 2 grid steps
    # whenever possible so both TensorCores (v7x megacore) get work.
    half = _round_up(pl.cdiv(n_pk, 2), 8)
    tm = max(8, min(_round_up(block_rows, 8), half))
    grid = (pl.cdiv(n_pk, tm),)

    kernel = functools.partial(_planar_flow_kernel, epsilon=epsilon,
                               num_layers=num_layers)
    y_packed, ld_packed = pl.pallas_call(
        kernel,
        out_shape=(
            jax.ShapeDtypeStruct((n_pk, lanes), z.dtype),
            jax.ShapeDtypeStruct((n_pk, pack), jnp.float32),
        ),
        grid_spec=pltpu.PrefetchScalarGridSpec(
            num_scalar_prefetch=0,
            grid=grid,
            in_specs=[
                pl.BlockSpec(memory_space=pltpu.SMEM),                # (b, uw)
                pl.BlockSpec((tm, lanes), lambda i: (i, 0)),          # z tile
                pl.BlockSpec((num_layers, lanes), lambda i: (0, 0)),  # w tiled
                pl.BlockSpec((num_layers, lanes), lambda i: (0, 0)),  # u_hat tiled
                pl.BlockSpec((lanes, lanes), lambda i: (0, 0)),       # block-diag
                pl.BlockSpec((lanes, pack), lambda i: (0, 0)),        # segment pick
            ],
            out_specs=[
                pl.BlockSpec((tm, lanes), lambda i: (i, 0)),          # y
                pl.BlockSpec((tm, pack), lambda i: (i, 0)),           # log_det
            ],
        ),
        compiler_params=pltpu.CompilerParams(
            dimension_semantics=("parallel",),
            vmem_limit_bytes=40 * 1024 * 1024),
    )(scal, z_packed, w_tiled, u_tiled, bdiag, pick)

    y = y_packed.reshape(n_eff, dim)[:n].reshape(*lead_shape, dim)
    log_det = ld_packed.reshape(n_eff)[:n].reshape(lead_shape)
    return y, log_det


def _reference_flow(z, ws, bs, us, epsilon=1e-4):
    """Pure-JAX reference (elementwise mul + sum; avoids TPU matmul defaults)."""
    log_det_sum = jnp.zeros(z.shape[:-1], jnp.float32)
    for l in range(ws.shape[0]):
        w, b, u = ws[l], bs[l], us[l]
        wtu = jnp.sum(u * w)
        m_wtu = -1.0 + jax.nn.softplus(wtu)
        u_hat = jnp.where(wtu >= -1.0, u, u + (m_wtu - wtu) * w / jnp.sum(w * w))
        a = jnp.tanh(jnp.sum(z * w, axis=-1, keepdims=True) + b)
        z = z + u_hat * a
        psi = (1.0 - a ** 2) * w
        abs_det = jnp.abs(1.0 + jnp.sum(u_hat * psi, axis=-1))
        log_det_sum = log_det_sum + jnp.log(epsilon + abs_det)
    return z, log_det_sum


if __name__ == "__main__":
    key = jax.random.PRNGKey(0)
    kw, kb, ku, kz = jax.random.split(key, 4)

    dim = 32
    num_layers = 6
    batch, seq = 4, 16

    # Deterministic parameter init mirroring PlanarTransform.__init__ (randn * 0.1).
    ws = jax.random.normal(kw, (num_layers, dim), dtype=jnp.float32) * 0.1
    bs = jax.random.normal(kb, (num_layers,), dtype=jnp.float32) * 0.1
    us = jax.random.normal(ku, (num_layers, dim), dtype=jnp.float32) * 0.1

    z = jax.random.normal(kz, (batch, seq, dim), dtype=jnp.float32)

    y, log_det = planar_flow(z, ws, bs, us)
    y = jax.block_until_ready(y)
    log_det = jax.block_until_ready(log_det)

    y_ref, ld_ref = _reference_flow(z, ws, bs, us)
    assert y.shape == z.shape and log_det.shape == z.shape[:-1]
    assert jnp.allclose(y, y_ref, atol=1e-5, rtol=1e-4)
    assert jnp.allclose(log_det, ld_ref, atol=1e-5, rtol=1e-4)

    print("KERNEL_OK")
</pallas_src>

<mosaic_0001>
module attributes {stable_mosaic.version = 11 : i64} {
  func.func @_planar_flow_kernel(%arg0: i32, %arg1: memref<6x2xf32, #tpu.memory_space<smem>>, %arg2: memref<8x128xf32, #tpu.memory_space<vmem>>, %arg3: memref<6x128xf32, #tpu.memory_space<vmem>>, %arg4: memref<6x128xf32, #tpu.memory_space<vmem>>, %arg5: memref<128x128xbf16, #tpu.memory_space<vmem>>, %arg6: memref<128x4xbf16, #tpu.memory_space<vmem>>, %arg7: memref<8x128xf32, #tpu.memory_space<vmem>>, %arg8: memref<8x4xf32, #tpu.memory_space<vmem>>) attributes {dimension_semantics = [#tpu.dimension_semantics<parallel>], iteration_bounds = array<i64: 2>, scalar_prefetch = 0 : i64, scratch_operands = 0 : i64, tpu.core_type = #tpu.core_type<tc>, window_params = [{transform_indices = @transform_0, window_bounds = array<i64: 6, 2>}, {transform_indices = @transform_1, window_bounds = array<i64: 8, 128>}, {pipeline_mode = #tpu.pipeline_mode<synchronous>, transform_indices = @transform_2, window_bounds = array<i64: 6, 128>}, {pipeline_mode = #tpu.pipeline_mode<synchronous>, transform_indices = @transform_3, window_bounds = array<i64: 6, 128>}, {pipeline_mode = #tpu.pipeline_mode<synchronous>, transform_indices = @transform_4, window_bounds = array<i64: 128, 128>}, {pipeline_mode = #tpu.pipeline_mode<synchronous>, transform_indices = @transform_5, window_bounds = array<i64: 128, 4>}, {transform_indices = @transform_6, window_bounds = array<i64: 8, 128>}, {transform_indices = @transform_7, window_bounds = array<i64: 8, 4>}]} {
    %c0 = arith.constant 0 : index
    %c0_0 = arith.constant 0 : index
    %0 = vector.load %arg2[%c0, %c0_0] : memref<8x128xf32, #tpu.memory_space<vmem>>, vector<8x128xf32>
    %c0_1 = arith.constant 0 : index
    %c0_2 = arith.constant 0 : index
    %1 = vector.load %arg5[%c0_1, %c0_2] : memref<128x128xbf16, #tpu.memory_space<vmem>>, vector<128x128xbf16>
    %c0_3 = arith.constant 0 : index
    %c0_4 = arith.constant 0 : index
    %2 = vector.load %arg6[%c0_3, %c0_4] : memref<128x4xbf16, #tpu.memory_space<vmem>>, vector<128x4xbf16>
    %c0_5 = arith.constant 0 : index
    %c0_6 = arith.constant 0 : index
    %3 = vector.load %arg3[%c0_5, %c0_6] : memref<6x128xf32, #tpu.memory_space<vmem>>, vector<6x128xf32>
    %c0_7 = arith.constant 0 : index
    %c0_8 = arith.constant 0 : index
    %4 = vector.load %arg4[%c0_7, %c0_8] : memref<6x128xf32, #tpu.memory_space<vmem>>, vector<6x128xf32>
    %5 = vector.extract_strided_slice %3 {offsets = [0, 0], sizes = [1, 128], strides = [1, 1]} : vector<6x128xf32> to vector<1x128xf32>
    %6 = vector.extract_strided_slice %4 {offsets = [0, 0], sizes = [1, 128], strides = [1, 1]} : vector<6x128xf32> to vector<1x128xf32>
    %c0_9 = arith.constant 0 : index
    %c0_10 = arith.constant 0 : index
    %7 = memref.load %arg1[%c0_9, %c0_10] : memref<6x2xf32, #tpu.memory_space<smem>>
    %c0_11 = arith.constant 0 : index
    %c1 = arith.constant 1 : index
    %8 = memref.load %arg1[%c0_11, %c1] : memref<6x2xf32, #tpu.memory_space<smem>>
    %9 = vector.broadcast %5 : vector<1x128xf32> to vector<8x128xf32>
    %10 = arith.mulf %0, %9 : vector<8x128xf32>
    %11 = arith.truncf %10 : vector<8x128xf32> to vector<8x128xbf16>
    %12 = arith.extf %11 : vector<8x128xbf16> to vector<8x128xf32>
    %13 = arith.subf %10, %12 : vector<8x128xf32>
    %14 = arith.truncf %13 : vector<8x128xf32> to vector<8x128xbf16>
    %cst = arith.constant dense<0.000000e+00> : vector<8x128xf32>
    %15 = tpu.matmul %11, %1, %cst {dimension_numbers = #tpu.dot_dimension_numbers<[1], [0], [0], [1], [0, 0, 1, 1], [], []>} : vector<8x128xbf16>, vector<128x128xbf16>, vector<8x128xf32> -> vector<8x128xf32>
    %cst_12 = arith.constant dense<0.000000e+00> : vector<8x128xf32>
    %16 = tpu.matmul %14, %1, %cst_12 {dimension_numbers = #tpu.dot_dimension_numbers<[1], [0], [0], [1], [0, 0, 1, 1], [], []>} : vector<8x128xbf16>, vector<128x128xbf16>, vector<8x128xf32> -> vector<8x128xf32>
    %17 = arith.addf %15, %16 : vector<8x128xf32>
    %18 = vector.broadcast %7 : f32 to vector<8x128xf32>
    %19 = arith.addf %17, %18 : vector<8x128xf32>
    %20 = math.tanh %19 : vector<8x128xf32>
    %21 = vector.broadcast %6 : vector<1x128xf32> to vector<8x128xf32>
    %22 = arith.mulf %21, %20 : vector<8x128xf32>
    %23 = arith.addf %0, %22 : vector<8x128xf32>
    %24 = arith.mulf %20, %20 : vector<8x128xf32>
    %cst_13 = arith.constant 1.000000e+00 : f32
    %25 = vector.broadcast %cst_13 : f32 to vector<8x128xf32>
    %26 = arith.subf %25, %24 : vector<8x128xf32>
    %27 = vector.broadcast %8 : f32 to vector<8x128xf32>
    %28 = arith.mulf %26, %27 : vector<8x128xf32>
    %cst_14 = arith.constant 1.000000e+00 : f32
    %29 = vector.broadcast %cst_14 : f32 to vector<8x128xf32>
    %30 = arith.addf %29, %28 : vector<8x128xf32>
    %31 = math.absf %30 : vector<8x128xf32>
    %cst_15 = arith.constant 9.99999974E-5 : f32
    %32 = vector.broadcast %cst_15 : f32 to vector<8x128xf32>
    %33 = arith.addf %32, %31 : vector<8x128xf32>
    %34 = vector.extract_strided_slice %3 {offsets = [1, 0], sizes = [1, 128], strides = [1, 1]} : vector<6x128xf32> to vector<1x128xf32>
    %35 = vector.extract_strided_slice %4 {offsets = [1, 0], sizes = [1, 128], strides = [1, 1]} : vector<6x128xf32> to vector<1x128xf32>
    %c1_16 = arith.constant 1 : index
    %c0_17 = arith.constant 0 : index
    %36 = memref.load %arg1[%c1_16, %c0_17] : memref<6x2xf32, #tpu.memory_space<smem>>
    %c1_18 = arith.constant 1 : index
    %c1_19 = arith.constant 1 : index
    %37 = memref.load %arg1[%c1_18, %c1_19] : memref<6x2xf32, #tpu.memory_space<smem>>
    %38 = vector.broadcast %34 : vector<1x128xf32> to vector<8x128xf32>
    %39 = arith.mulf %23, %38 : vector<8x128xf32>
    %40 = arith.truncf %39 : vector<8x128xf32> to vector<8x128xbf16>
    %41 = arith.extf %40 : vector<8x128xbf16> to vector<8x128xf32>
    %42 = arith.subf %39, %41 : vector<8x128xf32>
    %43 = arith.truncf %42 : vector<8x128xf32> to vector<8x128xbf16>
    %cst_20 = arith.constant dense<0.000000e+00> : vector<8x128xf32>
    %44 = tpu.matmul %40, %1, %cst_20 {dimension_numbers = #tpu.dot_dimension_numbers<[1], [0], [0], [1], [0, 0, 1, 1], [], []>} : vector<8x128xbf16>, vector<128x128xbf16>, vector<8x128xf32> -> vector<8x128xf32>
    %cst_21 = arith.constant dense<0.000000e+00> : vector<8x128xf32>
    %45 = tpu.matmul %43, %1, %cst_21 {dimension_numbers = #tpu.dot_dimension_numbers<[1], [0], [0], [1], [0, 0, 1, 1], [], []>} : vector<8x128xbf16>, vector<128x128xbf16>, vector<8x128xf32> -> vector<8x128xf32>
    %46 = arith.addf %44, %45 : vector<8x128xf32>
    %47 = vector.broadcast %36 : f32 to vector<8x128xf32>
    %48 = arith.addf %46, %47 : vector<8x128xf32>
    %49 = math.tanh %48 : vector<8x128xf32>
    %50 = vector.broadcast %35 : vector<1x128xf32> to vector<8x128xf32>
    %51 = arith.mulf %50, %49 : vector<8x128xf32>
    %52 = arith.addf %23, %51 : vector<8x128xf32>
    %53 = arith.mulf %49, %49 : vector<8x128xf32>
    %cst_22 = arith.constant 1.000000e+00 : f32
    %54 = vector.broadcast %cst_22 : f32 to vector<8x128xf32>
    %55 = arith.subf %54, %53 : vector<8x128xf32>
    %56 = vector.broadcast %37 : f32 to vector<8x128xf32>
    %57 = arith.mulf %55, %56 : vector<8x128xf32>
    %cst_23 = arith.constant 1.000000e+00 : f32
    %58 = vector.broadcast %cst_23 : f32 to vector<8x128xf32>
    %59 = arith.addf %58, %57 : vector<8x128xf32>
    %60 = math.absf %59 : vector<8x128xf32>
    %cst_24 = arith.constant 9.99999974E-5 : f32
    %61 = vector.broadcast %cst_24 : f32 to vector<8x128xf32>
    %62 = arith.addf %61, %60 : vector<8x128xf32>
    %63 = arith.mulf %33, %62 : vector<8x128xf32>
    %64 = vector.extract_strided_slice %3 {offsets = [2, 0], sizes = [1, 128], strides = [1, 1]} : vector<6x128xf32> to vector<1x128xf32>
    %65 = vector.extract_strided_slice %4 {offsets = [2, 0], sizes = [1, 128], strides = [1, 1]} : vector<6x128xf32> to vector<1x128xf32>
    %c2 = arith.constant 2 : index
    %c0_25 = arith.constant 0 : index
    %66 = memref.load %arg1[%c2, %c0_25] : memref<6x2xf32, #tpu.memory_space<smem>>
    %c2_26 = arith.constant 2 : index
    %c1_27 = arith.constant 1 : index
    %67 = memref.load %arg1[%c2_26, %c1_27] : memref<6x2xf32, #tpu.memory_space<smem>>
    %68 = vector.broadcast %64 : vector<1x128xf32> to vector<8x128xf32>
    %69 = arith.mulf %52, %68 : vector<8x128xf32>
    %70 = arith.truncf %69 : vector<8x128xf32> to vector<8x128xbf16>
    %71 = arith.extf %70 : vector<8x128xbf16> to vector<8x128xf32>
    %72 = arith.subf %69, %71 : vector<8x128xf32>
    %73 = arith.truncf %72 : vector<8x128xf32> to vector<8x128xbf16>
    %cst_28 = arith.constant dense<0.000000e+00> : vector<8x128xf32>
    %74 = tpu.matmul %70, %1, %cst_28 {dimension_numbers = #tpu.dot_dimension_numbers<[1], [0], [0], [1], [0, 0, 1, 1], [], []>} : vector<8x128xbf16>, vector<128x128xbf16>, vector<8x128xf32> -> vector<8x128xf32>
    %cst_29 = arith.constant dense<0.000000e+00> : vector<8x128xf32>
    %75 = tpu.matmul %73, %1, %cst_29 {dimension_numbers = #tpu.dot_dimension_numbers<[1], [0], [0], [1], [0, 0, 1, 1], [], []>} : vector<8x128xbf16>, vector<128x128xbf16>, vector<8x128xf32> -> vector<8x128xf32>
    %76 = arith.addf %74, %75 : vector<8x128xf32>
    %77 = vector.broadcast %66 : f32 to vector<8x128xf32>
    %78 = arith.addf %76, %77 : vector<8x128xf32>
    %79 = math.tanh %78 : vector<8x128xf32>
    %80 = vector.broadcast %65 : vector<1x128xf32> to vector<8x128xf32>
    %81 = arith.mulf %80, %79 : vector<8x128xf32>
    %82 = arith.addf %52, %81 : vector<8x128xf32>
    %83 = arith.mulf %79, %79 : vector<8x128xf32>
    %cst_30 = arith.constant 1.000000e+00 : f32
    %84 = vector.broadcast %cst_30 : f32 to vector<8x128xf32>
    %85 = arith.subf %84, %83 : vector<8x128xf32>
    %86 = vector.broadcast %67 : f32 to vector<8x128xf32>
    %87 = arith.mulf %85, %86 : vector<8x128xf32>
    %cst_31 = arith.constant 1.000000e+00 : f32
    %88 = vector.broadcast %cst_31 : f32 to vector<8x128xf32>
    %89 = arith.addf %88, %87 : vector<8x128xf32>
    %90 = math.absf %89 : vector<8x128xf32>
    %cst_32 = arith.constant 9.99999974E-5 : f32
    %91 = vector.broadcast %cst_32 : f32 to vector<8x128xf32>
    %92 = arith.addf %91, %90 : vector<8x128xf32>
    %93 = arith.mulf %63, %92 : vector<8x128xf32>
    %94 = vector.extract_strided_slice %3 {offsets = [3, 0], sizes = [1, 128], strides = [1, 1]} : vector<6x128xf32> to vector<1x128xf32>
    %95 = vector.extract_strided_slice %4 {offsets = [3, 0], sizes = [1, 128], strides = [1, 1]} : vector<6x128xf32> to vector<1x128xf32>
    %c3 = arith.constant 3 : index
    %c0_33 = arith.constant 0 : index
    %96 = memref.load %arg1[%c3, %c0_33] : memref<6x2xf32, #tpu.memory_space<smem>>
    %c3_34 = arith.constant 3 : index
    %c1_35 = arith.constant 1 : index
    %97 = memref.load %arg1[%c3_34, %c1_35] : memref<6x2xf32, #tpu.memory_space<smem>>
    %98 = vector.broadcast %94 : vector<1x128xf32> to vector<8x128xf32>
    %99 = arith.mulf %82, %98 : vector<8x128xf32>
    %100 = arith.truncf %99 : vector<8x128xf32> to vector<8x128xbf16>
    %101 = arith.extf %100 : vector<8x128xbf16> to vector<8x128xf32>
    %102 = arith.subf %99, %101 : vector<8x128xf32>
    %103 = arith.truncf %102 : vector<8x128xf32> to vector<8x128xbf16>
    %cst_36 = arith.constant dense<0.000000e+00> : vector<8x128xf32>
    %104 = tpu.matmul %100, %1, %cst_36 {dimension_numbers = #tpu.dot_dimension_numbers<[1], [0], [0], [1], [0, 0, 1, 1], [], []>} : vector<8x128xbf16>, vector<128x128xbf16>, vector<8x128xf32> -> vector<8x128xf32>
    %cst_37 = arith.constant dense<0.000000e+00> : vector<8x128xf32>
    %105 = tpu.matmul %103, %1, %cst_37 {dimension_numbers = #tpu.dot_dimension_numbers<[1], [0], [0], [1], [0, 0, 1, 1], [], []>} : vector<8x128xbf16>, vector<128x128xbf16>, vector<8x128xf32> -> vector<8x128xf32>
    %106 = arith.addf %104, %105 : vector<8x128xf32>
    %107 = vector.broadcast %96 : f32 to vector<8x128xf32>
    %108 = arith.addf %106, %107 : vector<8x128xf32>
    %109 = math.tanh %108 : vector<8x128xf32>
    %110 = vector.broadcast %95 : vector<1x128xf32> to vector<8x128xf32>
    %111 = arith.mulf %110, %109 : vector<8x128xf32>
    %112 = arith.addf %82, %111 : vector<8x128xf32>
    %113 = arith.mulf %109, %109 : vector<8x128xf32>
    %cst_38 = arith.constant 1.000000e+00 : f32
    %114 = vector.broadcast %cst_38 : f32 to vector<8x128xf32>
    %115 = arith.subf %114, %113 : vector<8x128xf32>
    %116 = vector.broadcast %97 : f32 to vector<8x128xf32>
    %117 = arith.mulf %115, %116 : vector<8x128xf32>
    %cst_39 = arith.constant 1.000000e+00 : f32
    %118 = vector.broadcast %cst_39 : f32 to vector<8x128xf32>
    %119 = arith.addf %118, %117 : vector<8x128xf32>
    %120 = math.absf %119 : vector<8x128xf32>
    %cst_40 = arith.constant 9.99999974E-5 : f32
    %121 = vector.broadcast %cst_40 : f32 to vector<8x128xf32>
    %122 = arith.addf %121, %120 : vector<8x128xf32>
    %123 = arith.mulf %93, %122 : vector<8x128xf32>
    %124 = vector.extract_strided_slice %3 {offsets = [4, 0], sizes = [1, 128], strides = [1, 1]} : vector<6x128xf32> to vector<1x128xf32>
    %125 = vector.extract_strided_slice %4 {offsets = [4, 0], sizes = [1, 128], strides = [1, 1]} : vector<6x128xf32> to vector<1x128xf32>
    %c4 = arith.constant 4 : index
    %c0_41 = arith.constant 0 : index
    %126 = memref.load %arg1[%c4, %c0_41] : memref<6x2xf32, #tpu.memory_space<smem>>
    %c4_42 = arith.constant 4 : index
    %c1_43 = arith.constant 1 : index
    %127 = memref.load %arg1[%c4_42, %c1_43] : memref<6x2xf32, #tpu.memory_space<smem>>
    %128 = vector.broadcast %124 : vector<1x128xf32> to vector<8x128xf32>
    %129 = arith.mulf %112, %128 : vector<8x128xf32>
    %130 = arith.truncf %129 : vector<8x128xf32> to vector<8x128xbf16>
    %131 = arith.extf %130 : vector<8x128xbf16> to vector<8x128xf32>
    %132 = arith.subf %129, %131 : vector<8x128xf32>
    %133 = arith.truncf %132 : vector<8x128xf32> to vector<8x128xbf16>
    %cst_44 = arith.constant dense<0.000000e+00> : vector<8x128xf32>
    %134 = tpu.matmul %130, %1, %cst_44 {dimension_numbers = #tpu.dot_dimension_numbers<[1], [0], [0], [1], [0, 0, 1, 1], [], []>} : vector<8x128xbf16>, vector<128x128xbf16>, vector<8x128xf32> -> vector<8x128xf32>
    %cst_45 = arith.constant dense<0.000000e+00> : vector<8x128xf32>
    %135 = tpu.matmul %133, %1, %cst_45 {dimension_numbers = #tpu.dot_dimension_numbers<[1], [0], [0], [1], [0, 0, 1, 1], [], []>} : vector<8x128xbf16>, vector<128x128xbf16>, vector<8x128xf32> -> vector<8x128xf32>
    %136 = arith.addf %134, %135 : vector<8x128xf32>
    %137 = vector.broadcast %126 : f32 to vector<8x128xf32>
    %138 = arith.addf %136, %137 : vector<8x128xf32>
    %139 = math.tanh %138 : vector<8x128xf32>
    %140 = vector.broadcast %125 : vector<1x128xf32> to vector<8x128xf32>
    %141 = arith.mulf %140, %139 : vector<8x128xf32>
    %142 = arith.addf %112, %141 : vector<8x128xf32>
    %143 = arith.mulf %139, %139 : vector<8x128xf32>
    %cst_46 = arith.constant 1.000000e+00 : f32
    %144 = vector.broadcast %cst_46 : f32 to vector<8x128xf32>
    %145 = arith.subf %144, %143 : vector<8x128xf32>
    %146 = vector.broadcast %127 : f32 to vector<8x128xf32>
    %147 = arith.mulf %145, %146 : vector<8x128xf32>
    %cst_47 = arith.constant 1.000000e+00 : f32
    %148 = vector.broadcast %cst_47 : f32 to vector<8x128xf32>
    %149 = arith.addf %148, %147 : vector<8x128xf32>
    %150 = math.absf %149 : vector<8x128xf32>
    %cst_48 = arith.constant 9.99999974E-5 : f32
    %151 = vector.broadcast %cst_48 : f32 to vector<8x128xf32>
    %152 = arith.addf %151, %150 : vector<8x128xf32>
    %153 = arith.mulf %123, %152 : vector<8x128xf32>
    %154 = vector.extract_strided_slice %3 {offsets = [5, 0], sizes = [1, 128], strides = [1, 1]} : vector<6x128xf32> to vector<1x128xf32>
    %155 = vector.extract_strided_slice %4 {offsets = [5, 0], sizes = [1, 128], strides = [1, 1]} : vector<6x128xf32> to vector<1x128xf32>
    %c5 = arith.constant 5 : index
    %c0_49 = arith.constant 0 : index
    %156 = memref.load %arg1[%c5, %c0_49] : memref<6x2xf32, #tpu.memory_space<smem>>
    %c5_50 = arith.constant 5 : index
    %c1_51 = arith.constant 1 : index
    %157 = memref.load %arg1[%c5_50, %c1_51] : memref<6x2xf32, #tpu.memory_space<smem>>
    %158 = vector.broadcast %154 : vector<1x128xf32> to vector<8x128xf32>
    %159 = arith.mulf %142, %158 : vector<8x128xf32>
    %160 = arith.truncf %159 : vector<8x128xf32> to vector<8x128xbf16>
    %161 = arith.extf %160 : vector<8x128xbf16> to vector<8x128xf32>
    %162 = arith.subf %159, %161 : vector<8x128xf32>
    %163 = arith.truncf %162 : vector<8x128xf32> to vector<8x128xbf16>
    %cst_52 = arith.constant dense<0.000000e+00> : vector<8x128xf32>
    %164 = tpu.matmul %160, %1, %cst_52 {dimension_numbers = #tpu.dot_dimension_numbers<[1], [0], [0], [1], [0, 0, 1, 1], [], []>} : vector<8x128xbf16>, vector<128x128xbf16>, vector<8x128xf32> -> vector<8x128xf32>
    %cst_53 = arith.constant dense<0.000000e+00> : vector<8x128xf32>
    %165 = tpu.matmul %163, %1, %cst_53 {dimension_numbers = #tpu.dot_dimension_numbers<[1], [0], [0], [1], [0, 0, 1, 1], [], []>} : vector<8x128xbf16>, vector<128x128xbf16>, vector<8x128xf32> -> vector<8x128xf32>
    %166 = arith.addf %164, %165 : vector<8x128xf32>
    %167 = vector.broadcast %156 : f32 to vector<8x128xf32>
    %168 = arith.addf %166, %167 : vector<8x128xf32>
    %169 = math.tanh %168 : vector<8x128xf32>
    %170 = vector.broadcast %155 : vector<1x128xf32> to vector<8x128xf32>
    %171 = arith.mulf %170, %169 : vector<8x128xf32>
    %172 = arith.addf %142, %171 : vector<8x128xf32>
    %173 = arith.mulf %169, %169 : vector<8x128xf32>
    %cst_54 = arith.constant 1.000000e+00 : f32
    %174 = vector.broadcast %cst_54 : f32 to vector<8x128xf32>
    %175 = arith.subf %174, %173 : vector<8x128xf32>
    %176 = vector.broadcast %157 : f32 to vector<8x128xf32>
    %177 = arith.mulf %175, %176 : vector<8x128xf32>
    %cst_55 = arith.constant 1.000000e+00 : f32
    %178 = vector.broadcast %cst_55 : f32 to vector<8x128xf32>
    %179 = arith.addf %178, %177 : vector<8x128xf32>
    %180 = math.absf %179 : vector<8x128xf32>
    %cst_56 = arith.constant 9.99999974E-5 : f32
    %181 = vector.broadcast %cst_56 : f32 to vector<8x128xf32>
    %182 = arith.addf %181, %180 : vector<8x128xf32>
    %183 = arith.mulf %153, %182 : vector<8x128xf32>
    %c0_57 = arith.constant 0 : index
    %c0_58 = arith.constant 0 : index
    %184 = vector.load %arg7[%c0_57, %c0_58] : memref<8x128xf32, #tpu.memory_space<vmem>>, vector<8x128xf32>
    tpu.vector_store %arg7[%c0_57, %c0_58], %172 {strides = array<i32>} : memref<8x128xf32, #tpu.memory_space<vmem>>, vector<8x128xf32>,
    %185 = math.log %183 : vector<8x128xf32>
    %186 = arith.truncf %185 : vector<8x128xf32> to vector<8x128xbf16>
    %187 = arith.extf %186 : vector<8x128xbf16> to vector<8x128xf32>
    %188 = arith.subf %185, %187 : vector<8x128xf32>
    %189 = arith.truncf %188 : vector<8x128xf32> to vector<8x128xbf16>
    %cst_59 = arith.constant dense<0.000000e+00> : vector<8x4xf32>
    %190 = tpu.matmul %186, %2, %cst_59 {dimension_numbers = #tpu.dot_dimension_numbers<[1], [0], [0], [1], [0, 0, 1, 1], [], []>} : vector<8x128xbf16>, vector<128x4xbf16>, vector<8x4xf32> -> vector<8x4xf32>
    %cst_60 = arith.constant dense<0.000000e+00> : vector<8x4xf32>
    %191 = tpu.matmul %189, %2, %cst_60 {dimension_numbers = #tpu.dot_dimension_numbers<[1], [0], [0], [1], [0, 0, 1, 1], [], []>} : vector<8x128xbf16>, vector<128x4xbf16>, vector<8x4xf32> -> vector<8x4xf32>
    %192 = arith.addf %190, %191 : vector<8x4xf32>
    %c0_61 = arith.constant 0 : index
    %c0_62 = arith.constant 0 : index
    %193 = vector.load %arg8[%c0_61, %c0_62] : memref<8x4xf32, #tpu.memory_space<vmem>>, vector<8x4xf32>
    tpu.vector_store %arg8[%c0_61, %c0_62], %192 {strides = array<i32>} : memref<8x4xf32, #tpu.memory_space<vmem>>, vector<8x4xf32>,
    return
  }
  func.func @transform_0(%arg0: i32) -> (i32, i32) {
    %c0_i32 = arith.constant 0 : i32
    %c0_i32_0 = arith.constant 0 : i32
    %c0_i32_1 = arith.constant 0 : i32
    return %c0_i32, %c0_i32_0 : i32, i32
  }
  func.func @transform_1(%arg0: i32) -> (i32, i32) {
    %c0_i32 = arith.constant 0 : i32
    %c0_i32_0 = arith.constant 0 : i32
    return %arg0, %c0_i32 : i32, i32
  }
  func.func @transform_2(%arg0: i32) -> (i32, i32) {
    %c0_i32 = arith.constant 0 : i32
    %c0_i32_0 = arith.constant 0 : i32
    %c0_i32_1 = arith.constant 0 : i32
    return %c0_i32, %c0_i32_0 : i32, i32
  }
  func.func @transform_3(%arg0: i32) -> (i32, i32) {
    %c0_i32 = arith.constant 0 : i32
    %c0_i32_0 = arith.constant 0 : i32
    %c0_i32_1 = arith.constant 0 : i32
    return %c0_i32, %c0_i32_0 : i32, i32
  }
  func.func @transform_4(%arg0: i32) -> (i32, i32) {
    %c0_i32 = arith.constant 0 : i32
    %c0_i32_0 = arith.constant 0 : i32
    %c0_i32_1 = arith.constant 0 : i32
    return %c0_i32, %c0_i32_0 : i32, i32
  }
  func.func @transform_5(%arg0: i32) -> (i32, i32) {
    %c0_i32 = arith.constant 0 : i32
    %c0_i32_0 = arith.constant 0 : i32
    %c0_i32_1 = arith.constant 0 : i32
    return %c0_i32, %c0_i32_0 : i32, i32
  }
  func.func @transform_6(%arg0: i32) -> (i32, i32) {
    %c0_i32 = arith.constant 0 : i32
    %c0_i32_0 = arith.constant 0 : i32
    return %arg0, %c0_i32 : i32, i32
  }
  func.func @transform_7(%arg0: i32) -> (i32, i32) {
    %c0_i32 = arith.constant 0 : i32
    %c0_i32_0 = arith.constant 0 : i32
    return %arg0, %c0_i32 : i32, i32
  }
}

</mosaic_0001>

<bundles_post_ra>
// kernel: tpu_custom_call.1
= control target key start
LH: loop header
LB: loop body
LE: loop exit
PB: predicated region body
PF: predicated region fallthrough
CT: control target
= control target key end

     0   :  { %s1647_s0 = inlined_call_operand.vmem [shape: f32[6,2], index: 0, kind: input, shape index: {}]   ;;  %s1648_s1 = inlined_call_operand.hbm [shape: f32[16,128], index: 1, kind: input, shape index: {}]   ;;  %s1649_s2 = inlined_call_operand.vmem [shape: f32[6,128], index: 2, kind: input, shape index: {}]   ;;  %s1650_s3 = inlined_call_operand.hbm [shape: f32[6,128], index: 3, kind: input, shape index: {}]   ;;  %s1651_s4 = inlined_call_operand.vmem [shape: bf16[128,128], index: 4, kind: input, shape index: {}]   ;;  %s1652_s5 = inlined_call_operand.vmem [shape: bf16[128,4], index: 5, kind: input, shape index: {}]   ;;  %s1653_s6 = inlined_call_operand.hbm [shape: f32[16,128], index: 6, kind: output, shape index: {0}]   ;;  %s1654_s7 = inlined_call_operand.vmem [shape: f32[16,4], index: 7, kind: output, shape index: {1}]  }
   0x1   :  { %1655 = sst [smem:[#allocation14_spill]] %s1647_s0 }
   0x2   :  { %1656 = sst [smem:[#allocation15_spill]] %s1648_s1 }
   0x3   :  { %13 = vsyncpa [#allocation5], 0 }
   0x4   :  { %14 = vsyncpa [#allocation3], 0 }
   0x5   :  { %16 = vsyncpa [#allocation3 + $0x1], 0 }
   0x6   :  { %17 = vsyncpa [#allocation8], 0 }
   0x7   :  { %18 = vsyncpa [#allocation4], 0 }
   0x8   :  { %20 = vsyncpa [#allocation4 + $0x1], 0  ;;  %s1310_s24 = smov 0   ;;  %s1312_s25 = smov 0  }
   0x9   :  { %s1314_s26 = smov 0   ;;  %s1316_s27 = smov 0  }
   0xa LB: > { %s1331_s28 = sadd.s32 4294967295, %s1266_s27   ;;  %s928_s29 = sadd.s32 4294967294, %s1266_s27   ;;  %s1266_s27 = sphi %s1316_s27, %s1668_s27   ;;  %s1262_s26 = sphi %s1314_s26, %s1667_s26   ;;  %s1258_s25 = sphi %s1312_s25, %s1666_s25   ;;  %s1254_s24 = sphi %s1310_s24, %s1665_s24  }
   0xb   : > { %p67_p0 = scmp.ne.s32.totalorder %s1258_s25, %s1254_s24  ;;  %p68_p1 = scmp.eq.s32.totalorder %s1331_s28, 0 }
   0xc   : > { %p175_p2 = scmp.eq.s32.totalorder %s1331_s28, 1  ;;  %p181_p3 = scmp.eq.s32.totalorder %s928_s29, 1 }
   0xd   : > { %p1340_p4 = por %p68_p1, %p67_p0  ;;  %p929_p5 = scmp.ge.s32.totalorder %s1266_s27, 1 }
   0xe   : > { %p1345_p6 = por %p181_p3, %p67_p0  ;;  %p214_p7 = scmp.lt.s32.totalorder %s1266_s27, 3 }
   0xf   : > { %s1659_s0 = sld [smem:[#allocation14_spill]]  ;;  %s239_s15 = sshll.u32 %s1650_s3, 4  ;;  %s240_s15 = int_to_ptr.hbm [resolvable:$true] %s239_s15 }
  0x10   : > { %p1353_p8 = pnand %p929_p5, %p214_p7  ;;  %s1268_s16 = smov [#allocation7]  }
  0x11   : > { %s241_s17 = sshll.u32 %s1268_s16, 4  ;;  %s1269_s18 = smov [#allocation2]   ;;  %s242_s17 = int_to_ptr.vmem [resolvable:$true] %s241_s17 }
  0x12   : > { %p1048_p10 = pneg %p1353_p8  ;;  %s1366_s19 = sadd.s32 1, %s1266_s27  }
  0x13   : > { %s54_s20 = sadd.s32 1, %s1262_s26  ;;  %s51_s21 = ssub.s32 %s1266_s27, %s1366_s19 }
  0x14   : > { %p1049_p11 = pnand %p1048_p10, %p68_p1  ;;  %p61_p12 = scmp.ne.s32.totalorder %s1262_s26, %s1258_s25 }
  0x15   : > { %s226_s11 = sshll.u32 %s1659_s0, 4  ;;  %p52_p13 = scmp.eq.s32.totalorder %s51_s21, 0  ;;  %s227_s11 = int_to_ptr.vmem [resolvable:$true] %s226_s11 }
  0x16   : > { %1051 = dma.vmem_to_smem (!%p1049_p11), %s227_s11, 128, %s1269_s18, [#allocation5]  }
  0x17   : > { %1054 = dma.hbm_to_vmem [thread:$0]  (!%p1049_p11), %s240_s15, 128, %s242_s17, [#allocation8]  }
  0x18   : > { %p62_p0 = scmp.eq.s32.totalorder %s1266_s27, 0  ;;  %p1376_p3 = por %p175_p2, %p61_p12 }
  0x19   : > { %p1065_p5 = scmp.lt.s32.totalorder %s1266_s27, 2  ;;  %s258_s29 = sand.u32 1, %s1262_s26  }
  0x1a   : > { %s1382_s23 = scalar_select %p52_p13, %s1262_s26, %s54_s20  }
  0x1b   : > { %p63_p7 = por %p62_p0, %p61_p12  ;;  %s933_s9 = sshll.u32 %s258_s29, 3 }
  0x1c   : > { %s934_s10 = sshll.u32 %s1266_s27, 3  ;;  %s1662_s1 = sld [smem:[#allocation15_spill]] }
  0x1d   : > { %s262_s15 = scalar_lea.vmem [#allocation6], %s933_s9  ;;  %p1389_p2 = pnand %p1065_p5, %p63_p7 }
  0x1e   : > { %s270_s16 = sshll.u32 %s262_s15, 4  ;;  %s259_s20 = scalar_lea.sflag [#allocation3], %s258_s29  ;;  %s271_s16 = int_to_ptr.vmem [resolvable:$true] %s270_s16 }
  0x1f   : > { %p1166_p11 = pneg %p1389_p2 }
  0x22   : > { %s266_s14 = scalar_lea.hbm %s1662_s1, %s934_s10  ;;  %s1169_s11 = scalar_lea.hbm %s1662_s1, 16 }
  0x23   : > { %s268_s17 = sshll.u32 %s266_s14, 4  ;;  %s269_s17 = int_to_ptr.hbm [resolvable:$true] %s268_s17 }
  0x24   : > { %s1162_s21 = sshra.s32 %s269_s17, 4  ;;  %s1163_s21 = int_to_ptr.hbm [resolvable:$true] %s1162_s21 }
  0x25   : > { %s1164_s0 = scalar_lea.hbm %s1163_s21, 8  ;;  %p1170_p0 = scmp.lt.s32.totalorder %s1163_s21, %s1662_s1 }
  0x26   : > { %p1165_p10 = scmp.ne.s32.totalorder %s1163_s21, %s1164_s0  ;;  %p1171_p5 = scmp.lt.s32.totalorder %s1169_s11, %s1164_s0 }
  0x28   : > { %p1167_p12 = pnand %p1166_p11, %p1165_p10  ;;  %p1172_p7 = por %p1171_p5, %p1170_p0 }
  0x2a   : > { %p1168_p13 = pneg %p1167_p12 }
  0x2c   : > { %p1173_p9 = pnand %p1172_p7, %p1168_p13 }
  0x2e   : > { %1176 = shalt.err (!%p1173_p9)
}
  0x2f   : > { %1058 = dma.hbm_to_vmem [thread:$0]  (!%p1389_p2), %s269_s17, 128, %s271_s16, %s259_s20  }
  0x30   : > { %279 = sbr.rel (%p1353_p8) target bundleno = 1169 (0x491), region = 44 }
  0x35   : > { %1237 = dma.done.wait (%p68_p1), [#allocation5], 128  }
  0x36   : > { %1239 = vsyncadd (%p68_p1), [#allocation5], 4294967168  ;;  %s1410_s29 = sand.u32 1, %s1258_s25  }
  0x37   : > { %s937_s0 = sshll.u32 %s1410_s29, 3  ;;  %s287_s15 = scalar_lea.sflag [#allocation3], %s1410_s29 }
  0x38   : > { %s290_s16 = scalar_lea.vmem [#allocation6], %s937_s0 }
  0x39   : > { %1241 = dma.done.wait (%p1340_p4), %s287_s15, 128  }
  0x3a   : > { %1243 = vsyncadd (%p1340_p4), %s287_s15, 4294967168 }
  0x3b   : > { %1245 = dma.done.wait (%p68_p1), [#allocation8], 128  }
  0x3c   : > { %1247 = vsyncadd (%p68_p1), [#allocation8], 4294967168 }
  0x3d   : > { %301 = sfence }
  0x3e   : > { %v1427_v0 = vld [vmem:[%s1651_s4 + $0x38] sm:$0xff]  ;;  %v1434_v1 = vld [vmem:[%s1651_s4 + $0x30] sm:$0xff]  ;;  %v1443_v2 = vld [vmem:[%s1651_s4 + $0x28] sm:$0xff]  ;;  %s371_s21 = sld [smem:[#allocation2]] }
  0x3f   : > { %427 = vmatpush.bf16.msra.mxu0 %v1427_v0  ;;  %440 = vmatpush.bf16.msra.mxu1 %v1427_v0  ;;  %v1448_v3 = vld [vmem:[%s1649_s2] sm:$0x3f]  ;;  %v1470_v8 = vld [vmem:[%s1651_s4 + $0x18] sm:$0xff]  ;;  %v1479_v10 = vld [vmem:[%s1651_s4 + $0x10] sm:$0xff]  ;;  %s974_s10 = sld [smem:[#allocation2 + $0x80]] }
  0x40   : > { %487 = vmatpush.bf16.msra.mxu3 %v1427_v0  ;;  %474 = vmatpush.bf16.msra.mxu2 %v1427_v0  ;;  %v373_v4 = vperm.slane %v1448_v3, 0  ;;  %v1458_v5 = vld [vmem:[%s1651_s4 + $0x20] sm:$0xff]  ;;  %v1488_v12 = vld [vmem:[%s1651_s4 + $0x8] sm:$0xff]  ;;  %v1553_v21 = vld [vmem:[#allocation7] sm:$0x3f]  ;;  %v468_v27 = vperm.slane %v1448_v3, 1 }
  0x41   : > { %v1460_v6 = vld [vmem:[%s290_s16] sm:$0xff]  ;;  %v456_v24 = vperm.slane %v1553_v21, 0  ;;  %s941_s9 = sld [smem:[#allocation2 + $0x1]]  ;;  %v503_v44 = vperm.slane %v1553_v21, 1  ;;  %v516_v49 = vperm.slane %v1448_v3, 2 }
  0x42   : > { %v374_v7 = vmul.f32 %v373_v4, %v1460_v6  ;;  %v1497_v14 = vld [vmem:[%s1651_s4] sm:$0xff]  ;;  %s975_s11 = sld [smem:[#allocation2 + $0x81]] }
  0x43   : > { %428 = vmatpush.bf16.msra.mxu0 %v1434_v1  ;;  %441 = vmatpush.bf16.msra.mxu1 %v1434_v1  ;;  %s976_s13 = sld [smem:[#allocation2 + $0x100]] }
  0x44   : > { %488 = vmatpush.bf16.msra.mxu3 %v1434_v1  ;;  %475 = vmatpush.bf16.msra.mxu2 %v1434_v1  ;;  %v375_v9 = vpack.c.bf16 %v374_v7, %v374_v7  ;;  %v453_v18 = vstv %s371_s21  ;;  %s977_s14 = sld [smem:[#allocation2 + $0x101]]  ;;  %s1212_s21 = scalar_lea.hbm %s1653_s6, 16 }
  0x45   : > { %v500_v36 = vstv %s974_s10  ;;  %s978_s15 = sld [smem:[#allocation2 + $0x180]] }
  0x46   : > { %v376_v11 = vunpack.c.l.bf16 %v375_v9  ;;  %s979_s16 = sld [smem:[#allocation2 + $0x181]] }
  0x47   : > { %429 = vmatpush.bf16.msra.mxu0 %v1443_v2  ;;  %442 = vmatpush.bf16.msra.mxu1 %v1443_v2  ;;  %v461_v42 = vstv %s941_s9  ;;  %s980_s12 = sld [smem:[#allocation2 + $0x200]]  ;;  %s325_s9 = scalar_lea.vmem [#allocation9], %s937_s0 }
  0x48   : > { %489 = vmatpush.bf16.msra.mxu3 %v1443_v2  ;;  %476 = vmatpush.bf16.msra.mxu2 %v1443_v2  ;;  %v377_v13 = vsub.f32 %v374_v7, %v376_v11  ;;  %v508_v50 = vstv %s975_s11  ;;  %s981_s17 = sld [smem:[#allocation2 + $0x201]]  ;;  %s1017_s11 = sshll.u32 %s1331_s28, 3 }
  0x49   : > { %s983_s10 = sld [smem:[#allocation2 + $0x281]]  ;;  %s804_s0 = scalar_lea.hbm %s1653_s6, %s1017_s11 }
  0x4a   : > { %v378_v15 = vpack.c.bf16 %v377_v13, %v377_v13 }
  0x4b   : > { %430 = vmatpush.bf16.msra.mxu0 %v1458_v5  ;;  %443 = vmatpush.bf16.msra.mxu1 %v1458_v5 }
  0x4c   : > { %490 = vmatpush.bf16.msra.mxu3 %v1458_v5  ;;  %477 = vmatpush.bf16.msra.mxu2 %v1458_v5 }
  0x4f   : > { %431 = vmatpush.bf16.msra.mxu0 %v1470_v8  ;;  %444 = vmatpush.bf16.msra.mxu1 %v1470_v8 }
  0x50   : > { %491 = vmatpush.bf16.msra.mxu3 %v1470_v8  ;;  %478 = vmatpush.bf16.msra.mxu2 %v1470_v8 }
  0x53   : > { %432 = vmatpush.bf16.msra.mxu0 %v1479_v10  ;;  %445 = vmatpush.bf16.msra.mxu1 %v1479_v10 }
  0x54   : > { %492 = vmatpush.bf16.msra.mxu3 %v1479_v10  ;;  %479 = vmatpush.bf16.msra.mxu2 %v1479_v10 }
  0x57   : > { %433 = vmatpush.bf16.msra.mxu0 %v1488_v12  ;;  %446 = vmatpush.bf16.msra.mxu1 %v1488_v12 }
  0x58   : > { %493 = vmatpush.bf16.msra.mxu3 %v1488_v12  ;;  %480 = vmatpush.bf16.msra.mxu2 %v1488_v12 }
  0x5b   : > { %434 = vmatpush.bf16.msra.mxu0 %v1497_v14  ;;  %447 = vmatpush.bf16.msra.mxu1 %v1497_v14 }
  0x5c   : > { %494 = vmatpush.bf16.msra.mxu3 %v1497_v14  ;;  %481 = vmatpush.bf16.msra.mxu2 %v1497_v14 }
  0x5e   : > { %435 = vmatmul.bf16.vlgmr.msra.gmra.mxu0 %v378_v15  ;;  %448 = vmatmul.bf16.vlgmr.msra.gmra.mxu1 %v375_v9  ;;  %v556_v15 = vstv %s977_s14 }
  0x5f   : > { %535 = vmatpush.bf16.msrb.mxu1 %v1427_v0  ;;  %522 = vmatpush.bf16.msrb.mxu0 %v1427_v0 }
  0x60   : > { %583 = vmatpush.bf16.msrb.mxu3 %v1427_v0  ;;  %570 = vmatpush.bf16.msrb.mxu2 %v1427_v0 }
  0x63   : > { %536 = vmatpush.bf16.msrb.mxu1 %v1434_v1  ;;  %523 = vmatpush.bf16.msrb.mxu0 %v1434_v1 }
  0x64   : > { %584 = vmatpush.bf16.msrb.mxu3 %v1434_v1  ;;  %571 = vmatpush.bf16.msrb.mxu2 %v1434_v1 }
  0x67   : > { %537 = vmatpush.bf16.msrb.mxu1 %v1443_v2  ;;  %524 = vmatpush.bf16.msrb.mxu0 %v1443_v2 }
  0x68   : > { %585 = vmatpush.bf16.msrb.mxu3 %v1443_v2  ;;  %572 = vmatpush.bf16.msrb.mxu2 %v1443_v2 }
  0x6b   : > { %538 = vmatpush.bf16.msrb.mxu1 %v1458_v5  ;;  %525 = vmatpush.bf16.msrb.mxu0 %v1458_v5 }
  0x6c   : > { %586 = vmatpush.bf16.msrb.mxu3 %v1458_v5  ;;  %573 = vmatpush.bf16.msrb.mxu2 %v1458_v5 }
  0x6f   : > { %539 = vmatpush.bf16.msrb.mxu1 %v1470_v8  ;;  %526 = vmatpush.bf16.msrb.mxu0 %v1470_v8 }
  0x70   : > { %587 = vmatpush.bf16.msrb.mxu3 %v1470_v8  ;;  %574 = vmatpush.bf16.msrb.mxu2 %v1470_v8 }
  0x73   : > { %540 = vmatpush.bf16.msrb.mxu1 %v1479_v10  ;;  %527 = vmatpush.bf16.msrb.mxu0 %v1479_v10 }
  0x74   : > { %588 = vmatpush.bf16.msrb.mxu3 %v1479_v10  ;;  %575 = vmatpush.bf16.msrb.mxu2 %v1479_v10 }
  0x77   : > { %541 = vmatpush.bf16.msrb.mxu1 %v1488_v12  ;;  %528 = vmatpush.bf16.msrb.mxu0 %v1488_v12 }
  0x78   : > { %589 = vmatpush.bf16.msrb.mxu3 %v1488_v12  ;;  %576 = vmatpush.bf16.msrb.mxu2 %v1488_v12 }
  0x7b   : > { %542 = vmatpush.bf16.msrb.mxu1 %v1497_v14  ;;  %529 = vmatpush.bf16.msrb.mxu0 %v1497_v14 }
  0x7c   : > { %590 = vmatpush.bf16.msrb.mxu3 %v1497_v14  ;;  %577 = vmatpush.bf16.msrb.mxu2 %v1497_v14 }
  0x7f   : > { %631 = vmatpush.bf16.msra.mxu1 %v1427_v0  ;;  %618 = vmatpush.bf16.msra.mxu0 %v1427_v0 }
  0x83   : > { %632 = vmatpush.bf16.msra.mxu1 %v1434_v1  ;;  %619 = vmatpush.bf16.msra.mxu0 %v1434_v1 }
  0x87   : > { %633 = vmatpush.bf16.msra.mxu1 %v1443_v2  ;;  %620 = vmatpush.bf16.msra.mxu0 %v1443_v2 }
  0x8b   : > { %634 = vmatpush.bf16.msra.mxu1 %v1458_v5  ;;  %621 = vmatpush.bf16.msra.mxu0 %v1458_v5 }
  0x8f   : > { %635 = vmatpush.bf16.msra.mxu1 %v1470_v8  ;;  %622 = vmatpush.bf16.msra.mxu0 %v1470_v8 }
  0x93   : > { %636 = vmatpush.bf16.msra.mxu1 %v1479_v10  ;;  %623 = vmatpush.bf16.msra.mxu0 %v1479_v10 }
  0x97   : > { %637 = vmatpush.bf16.msra.mxu1 %v1488_v12  ;;  %624 = vmatpush.bf16.msra.mxu0 %v1488_v12 }
  0x9b   : > { %638 = vmatpush.bf16.msra.mxu1 %v1497_v14  ;;  %625 = vmatpush.bf16.msra.mxu0 %v1497_v14 }
  0xdb   : > { %v436_v16 = vpop.f32.mrf.mxu0  ;;  %v449_v17 = vpop.f32.mrf.mxu1 }
  0xdc   : > { %v450_v19 = vadd.f32 %v449_v17, %v436_v16 }
  0xde   : > { %v454_v20 = vadd.f32 %v453_v18, %v450_v19 }
  0xe0   : > { %1103 = vtanh.f32 %v454_v20 }
  0xe3   : > { %v438_v22 = vpop.f32.mrf.mxu0  ;;  %v451_v23 = vpop.f32.mrf.mxu1 }
  0xe6   : > { %v1104_v25 = vpop.eup %1103 }
  0xe7   : > { %v457_v26 = vmul.f32 %v1104_v25, %v456_v24  ;;  %v459_v38 = vmul.f32 %v1104_v25, %v1104_v25 }
  0xe9   : > { %v458_v28 = vadd.f32 %v457_v26, %v1460_v6  ;;  %v460_v41 = vsub.f32 1.0, %v459_v38 }
  0xeb   : > { %v469_v29 = vmul.f32 %v468_v27, %v458_v28  ;;  %v462_v45 = vmul.f32 %v461_v42, %v460_v41  ;;  %v604_v41 = vstv %s979_s16  ;;  %s808_s16 = sshll.u32 %s804_s0, 4  ;;  %s809_s16 = int_to_ptr.hbm [resolvable:$true] %s808_s16 }
  0xed   : > { %v470_v30 = vpack.c.bf16 %v469_v29, %v469_v29  ;;  %v463_v51 = vadd.f32 1.0, %v462_v45 }
  0xef   : > { %v471_v31 = vunpack.c.l.bf16 %v470_v30  ;;  %495 = vmatmul.bf16.vlgmr.msra.gmra.mxu3 %v470_v30  ;;  %v464_v56 = vand.u32 2147483647, %v463_v51 }
  0xf0   : > { %679 = vmatpush.bf16.msra.mxu3 %v1427_v0 }
  0xf1   : > { %v472_v32 = vsub.f32 %v469_v29, %v471_v31  ;;  %v465_v61 = vadd.f32 0.0001, %v464_v56  ;;  %v596_v31 = vstv %s978_s15  ;;  %v644_v56 = vstv %s980_s12  ;;  %s806_s15 = sshll.u32 %s325_s9, 4  ;;  %s790_s12 = scalar_lea.sflag [#allocation4], %s1410_s29  ;;  %s807_s15 = int_to_ptr.vmem [resolvable:$true] %s806_s15 }
  0xf3   : > { %v473_v33 = vpack.c.bf16 %v472_v32, %v472_v32 }
  0xf4   : > { %680 = vmatpush.bf16.msra.mxu3 %v1434_v1 }
  0xf5   : > { %482 = vmatmul.bf16.vlgmr.msra.gmra.mxu2 %v473_v33 }
  0xf6   : > { %666 = vmatpush.bf16.msra.mxu2 %v1427_v0 }
  0xf8   : > { %681 = vmatpush.bf16.msra.mxu3 %v1443_v2 }
  0xfa   : > { %667 = vmatpush.bf16.msra.mxu2 %v1434_v1 }
  0xfc   : > { %682 = vmatpush.bf16.msra.mxu3 %v1458_v5 }
  0xfe   : > { %668 = vmatpush.bf16.msra.mxu2 %v1443_v2 }
 0x100   : > { %683 = vmatpush.bf16.msra.mxu3 %v1470_v8 }
 0x102   : > { %669 = vmatpush.bf16.msra.mxu2 %v1458_v5  ;;  %v548_v5 = vstv %s976_s13 }
 0x104   : > { %684 = vmatpush.bf16.msra.mxu3 %v1479_v10 }
 0x106   : > { %670 = vmatpush.bf16.msra.mxu2 %v1470_v8 }
 0x108   : > { %685 = vmatpush.bf16.msra.mxu3 %v1488_v12 }
 0x10a   : > { %671 = vmatpush.bf16.msra.mxu2 %v1479_v10  ;;  %v551_v10 = vperm.slane %v1553_v21, 2 }
 0x10c   : > { %686 = vmatpush.bf16.msra.mxu3 %v1497_v14 }
 0x10e   : > { %672 = vmatpush.bf16.msra.mxu2 %v1488_v12 }
 0x112   : > { %673 = vmatpush.bf16.msra.mxu2 %v1497_v14  ;;  %v564_v14 = vperm.slane %v1448_v3, 3 }
 0x172   : > { %v496_v34 = vpop.f32.mrf.mxu3 }
 0x178   : > { %v483_v35 = vpop.f32.mrf.mxu2 }
 0x179   : > { %v497_v37 = vadd.f32 %v496_v34, %v483_v35  ;;  %v599_v35 = vperm.slane %v1553_v21, 3 }
 0x17a   : > { %v498_v39 = vpop.f32.mrf.mxu3 }
 0x17b   : > { %v501_v40 = vadd.f32 %v500_v36, %v497_v37 }
 0x17d   : > { %1105 = vtanh.f32 %v501_v40  ;;  %v612_v40 = vperm.slane %v1448_v3, 4 }
 0x180   : > { %v485_v43 = vpop.f32.mrf.mxu2 }
 0x183   : > { %v1106_v46 = vpop.eup %1105 }
 0x184   : > { %v506_v47 = vmul.f32 %v1106_v46, %v1106_v46  ;;  %v504_v48 = vmul.f32 %v1106_v46, %v503_v44 }
 0x186   : > { %v507_v52 = vsub.f32 1.0, %v506_v47  ;;  %v505_v53 = vadd.f32 %v504_v48, %v458_v28 }
 0x188   : > { %v509_v54 = vmul.f32 %v508_v50, %v507_v52  ;;  %v517_v55 = vmul.f32 %v516_v49, %v505_v53 }
 0x18a   : > { %v510_v57 = vadd.f32 1.0, %v509_v54  ;;  %v518_v58 = vpack.c.bf16 %v517_v55, %v517_v55 }
 0x18c   : > { %v511_v59 = vand.u32 2147483647, %v510_v57  ;;  %v519_v60 = vunpack.c.l.bf16 %v518_v58  ;;  %543 = vmatmul.bf16.vlgmr.msrb.gmra.mxu1 %v518_v58 }
 0x18e   : > { %v512_v62 = vadd.f32 0.0001, %v511_v59  ;;  %v520_v63 = vsub.f32 %v517_v55, %v519_v60  ;;  %v647_v60 = vperm.slane %v1553_v21, 4 }
 0x190   : > { %v513_v0 = vmul.f32 %v512_v62, %v465_v61  ;;  %v521_v1 = vpack.c.bf16 %v520_v63, %v520_v63 }
 0x192   : > { %530 = vmatmul.bf16.vlgmr.msrb.gmra.mxu0 %v521_v1  ;;  %v660_v1 = vperm.slane %v1448_v3, 5  ;;  %v1034_v3 = vld [vmem:[%s1652_s5 + $0x30] sm:$0xff] }
 0x209   : > { %v544_v2 = vpop.f32.mrf.mxu1 }
 0x20f   : > { %v531_v4 = vpop.f32.mrf.mxu0 }
 0x210   : > { %v545_v6 = vadd.f32 %v544_v2, %v531_v4  ;;  %v652_v2 = vstv %s981_s17  ;;  %s982_s17 = sld [smem:[#allocation2 + $0x280]] }
 0x211   : > { %v546_v7 = vpop.f32.mrf.mxu1 }
 0x212   : > { %v549_v8 = vadd.f32 %v548_v5, %v545_v6 }
 0x214   : > { %1107 = vtanh.f32 %v549_v8 }
 0x217   : > { %v533_v9 = vpop.f32.mrf.mxu0 }
 0x21a   : > { %v1108_v11 = vpop.eup %1107 }
 0x21b   : > { %v554_v12 = vmul.f32 %v1108_v11, %v1108_v11  ;;  %v552_v13 = vmul.f32 %v1108_v11, %v551_v10 }
 0x21d   : > { %v555_v16 = vsub.f32 1.0, %v554_v12  ;;  %v553_v17 = vadd.f32 %v552_v13, %v505_v53 }
 0x21f   : > { %v557_v18 = vmul.f32 %v556_v15, %v555_v16  ;;  %v565_v19 = vmul.f32 %v564_v14, %v553_v17  ;;  %v1035_v16 = vld [vmem:[%s1652_s5 + $0x38] sm:$0xff] }
 0x220   : > { %774 = vmatpush.bf16.msrb.mxu1 %v1035_v16  ;;  %761 = vmatpush.bf16.msrb.mxu0 %v1035_v16 }
 0x221   : > { %v558_v20 = vadd.f32 1.0, %v557_v18  ;;  %v566_v22 = vpack.c.bf16 %v565_v19, %v565_v19  ;;  %v1032_v18 = vld [vmem:[%s1652_s5 + $0x20] sm:$0xff] }
 0x223   : > { %v559_v23 = vand.u32 2147483647, %v558_v20  ;;  %v567_v24 = vunpack.c.l.bf16 %v566_v22  ;;  %591 = vmatmul.bf16.vlgmr.msrb.gmra.mxu3 %v566_v22  ;;  %v1030_v20 = vld [vmem:[%s1652_s5 + $0x10] sm:$0xff] }
 0x224   : > { %775 = vmatpush.bf16.msrb.mxu1 %v1034_v3  ;;  %762 = vmatpush.bf16.msrb.mxu0 %v1034_v3 }
 0x225   : > { %v560_v25 = vadd.f32 0.0001, %v559_v23  ;;  %v568_v26 = vsub.f32 %v565_v19, %v567_v24  ;;  %v1031_v19 = vld [vmem:[%s1652_s5 + $0x18] sm:$0xff]  ;;  %v1029_v23 = vld [vmem:[%s1652_s5 + $0x8] sm:$0xff]  ;;  %v1028_v24 = vld [vmem:[%s1652_s5] sm:$0xff] }
 0x227   : > { %v561_v27 = vmul.f32 %v560_v25, %v513_v0  ;;  %v569_v28 = vpack.c.bf16 %v568_v26, %v568_v26  ;;  %v692_v26 = vstv %s982_s17  ;;  %s1206_s17 = sshra.s32 %s809_s16, 4  ;;  %s1207_s17 = int_to_ptr.hbm [resolvable:$true] %s1206_s17 }
 0x228   : > { %s1208_s18 = scalar_lea.hbm %s1207_s17, 8  ;;  %p1213_p9 = scmp.lt.s32.totalorder %s1207_s17, %s1653_s6 }
 0x229   : > { %578 = vmatmul.bf16.vlgmr.msrb.gmra.mxu2 %v569_v28  ;;  %p1209_p1 = scmp.ne.s32.totalorder %s1207_s17, %s1208_s18  ;;  %p1214_p2 = scmp.lt.s32.totalorder %s1212_s21, %s1208_s18 }
 0x22b   : > { %p1210_p4 = pnand %p1209_p1, %p1376_p3  ;;  %p1215_p10 = por %p1214_p2, %p1213_p9 }
 0x22d   : > { %p1211_p8 = pneg %p1210_p4 }
 0x22f   : > { %p1216_p11 = pnand %p1215_p10, %p1211_p8 }
 0x2a6   : > { %v592_v29 = vpop.f32.mrf.mxu3 }
 0x2ac   : > { %v579_v30 = vpop.f32.mrf.mxu2 }
 0x2ad   : > { %v593_v32 = vadd.f32 %v592_v29, %v579_v30 }
 0x2ae   : > { %v594_v33 = vpop.f32.mrf.mxu3 }
 0x2af   : > { %v597_v34 = vadd.f32 %v596_v31, %v593_v32  ;;  %v695_v31 = vperm.slane %v1553_v21, 5 }
 0x2b1   : > { %1109 = vtanh.f32 %v597_v34 }
 0x2b4   : > { %v581_v36 = vpop.f32.mrf.mxu2 }
 0x2b7   : > { %v1110_v37 = vpop.eup %1109 }
 0x2b8   : > { %v600_v38 = vmul.f32 %v1110_v37, %v599_v35  ;;  %v602_v39 = vmul.f32 %v1110_v37, %v1110_v37  ;;  %v700_v35 = vstv %s983_s10 }
 0x2ba   : > { %v603_v42 = vsub.f32 1.0, %v602_v39  ;;  %v601_v43 = vadd.f32 %v600_v38, %v553_v17  ;;  %v1033_v17 = vld [vmem:[%s1652_s5 + $0x28] sm:$0xff] }
 0x2bb   : > { %776 = vmatpush.bf16.msrb.mxu1 %v1033_v17  ;;  %763 = vmatpush.bf16.msrb.mxu0 %v1033_v17 }
 0x2bc   : > { %v605_v44 = vmul.f32 %v604_v41, %v603_v42  ;;  %v613_v45 = vmul.f32 %v612_v40, %v601_v43 }
 0x2be   : > { %v606_v46 = vadd.f32 1.0, %v605_v44  ;;  %v614_v47 = vpack.c.bf16 %v613_v45, %v613_v45 }
 0x2bf   : > { %777 = vmatpush.bf16.msrb.mxu1 %v1032_v18  ;;  %764 = vmatpush.bf16.msrb.mxu0 %v1032_v18 }
 0x2c0   : > { %v607_v48 = vand.u32 2147483647, %v606_v46  ;;  %v615_v49 = vunpack.c.l.bf16 %v614_v47  ;;  %639 = vmatmul.bf16.vlgmr.msra.gmra.mxu1 %v614_v47 }
 0x2c2   : > { %v608_v50 = vadd.f32 0.0001, %v607_v48  ;;  %v616_v51 = vsub.f32 %v613_v45, %v615_v49 }
 0x2c3   : > { %778 = vmatpush.bf16.msrb.mxu1 %v1031_v19  ;;  %765 = vmatpush.bf16.msrb.mxu0 %v1031_v19 }
 0x2c4   : > { %v617_v52 = vpack.c.bf16 %v616_v51, %v616_v51  ;;  %v609_v53 = vmul.f32 %v608_v50, %v561_v27 }
 0x2c6   : > { %626 = vmatmul.bf16.vlgmr.msra.gmra.mxu0 %v617_v52 }
 0x2c7   : > { %779 = vmatpush.bf16.msrb.mxu1 %v1030_v20  ;;  %766 = vmatpush.bf16.msrb.mxu0 %v1030_v20 }
 0x2cb   : > { %780 = vmatpush.bf16.msrb.mxu1 %v1029_v23  ;;  %767 = vmatpush.bf16.msrb.mxu0 %v1029_v23 }
 0x2cf   : > { %781 = vmatpush.bf16.msrb.mxu1 %v1028_v24  ;;  %768 = vmatpush.bf16.msrb.mxu0 %v1028_v24 }
 0x33d   : > { %v640_v54 = vpop.f32.mrf.mxu1 }
 0x343   : > { %v627_v55 = vpop.f32.mrf.mxu0 }
 0x344   : > { %v641_v57 = vadd.f32 %v640_v54, %v627_v55 }
 0x345   : > { %v642_v58 = vpop.f32.mrf.mxu1 }
 0x346   : > { %v645_v59 = vadd.f32 %v644_v56, %v641_v57 }
 0x348   : > { %1111 = vtanh.f32 %v645_v59 }
 0x34b   : > { %v629_v61 = vpop.f32.mrf.mxu0 }
 0x34e   : > { %v1112_v62 = vpop.eup %1111 }
 0x34f   : > { %v648_v63 = vmul.f32 %v1112_v62, %v647_v60  ;;  %v650_v0 = vmul.f32 %v1112_v62, %v1112_v62 }
 0x351   : > { %v651_v4 = vsub.f32 1.0, %v650_v0  ;;  %v649_v5 = vadd.f32 %v648_v63, %v601_v43 }
 0x353   : > { %v653_v6 = vmul.f32 %v652_v2, %v651_v4  ;;  %v661_v7 = vmul.f32 %v660_v1, %v649_v5 }
 0x355   : > { %v654_v8 = vadd.f32 1.0, %v653_v6  ;;  %v662_v9 = vpack.c.bf16 %v661_v7, %v661_v7 }
 0x357   : > { %v655_v10 = vand.u32 2147483647, %v654_v8  ;;  %v663_v11 = vunpack.c.l.bf16 %v662_v9  ;;  %687 = vmatmul.bf16.vlgmr.msra.gmra.mxu3 %v662_v9 }
 0x359   : > { %v656_v12 = vadd.f32 0.0001, %v655_v10  ;;  %v664_v13 = vsub.f32 %v661_v7, %v663_v11 }
 0x35b   : > { %v665_v14 = vpack.c.bf16 %v664_v13, %v664_v13  ;;  %v657_v15 = vmul.f32 %v656_v12, %v609_v53 }
 0x35d   : > { %674 = vmatmul.bf16.vlgmr.msra.gmra.mxu2 %v665_v14 }
 0x3da   : > { %v688_v22 = vpop.f32.mrf.mxu3 }
 0x3e0   : > { %v675_v25 = vpop.f32.mrf.mxu2 }
 0x3e1   : > { %v689_v27 = vadd.f32 %v688_v22, %v675_v25 }
 0x3e2   : > { %v690_v28 = vpop.f32.mrf.mxu3 }
 0x3e3   : > { %v693_v29 = vadd.f32 %v692_v26, %v689_v27 }
 0x3e5   : > { %1113 = vtanh.f32 %v693_v29 }
 0x3e8   : > { %v677_v30 = vpop.f32.mrf.mxu2 }
 0x3eb   : > { %v1114_v32 = vpop.eup %1113 }
 0x3ec   : > { %v698_v33 = vmul.f32 %v1114_v32, %v1114_v32  ;;  %v696_v34 = vmul.f32 %v1114_v32, %v695_v31 }
 0x3ee   : > { %v699_v36 = vsub.f32 1.0, %v698_v33  ;;  %v697_v37 = vadd.f32 %v696_v34, %v649_v5 }
 0x3f0   : > { %v701_v38 = vmul.f32 %v700_v35, %v699_v36  ;;  %706 = vst [vmem:[%s325_s9] sm:$0xff] %v697_v37 }
 0x3f2   : > { %v702_v39 = vadd.f32 1.0, %v701_v38 }
 0x3f4   : > { %v703_v40 = vand.u32 2147483647, %v702_v39 }
 0x3f6   : > { %v704_v41 = vadd.f32 0.0001, %v703_v40 }
 0x3f8   : > { %v705_v42 = vmul.f32 %v704_v41, %v657_v15 }
 0x3fa   : > { %1115 = vlog2.f32 %v705_v42 }
 0x400   : > { %v1116_v43 = vpop.eup %1115 }
 0x401   : > { %v708_v44 = vmul.f32 0.6931472, %v1116_v43 }
 0x403   : > { %v709_v21 = vpack.c.bf16 %v708_v44, %v708_v44 }
 0x405   : > { %v710_v45 = vunpack.c.l.bf16 %v709_v21  ;;  %782 = vmatmul.bf16.vlgmr.msrb.gmra.mxu1 %v709_v21 }
 0x407   : > { %v711_v46 = vsub.f32 %v708_v44, %v710_v45 }
 0x409   : > { %v712_v47 = vpack.c.bf16 %v711_v46, %v711_v46 }
 0x40b   : > { %769 = vmatmul.bf16.vlgmr.msrb.gmra.mxu0 %v712_v47 }
 0x40c   : > { %1219 = shalt.err (!%p1216_p11)
}
 0x40d   : > { %1046 = dma.vmem_to_hbm [thread:$0]  (%p1376_p3), %s807_s15, 128, %s809_s16, %s790_s12   ;;  %vm787_vm0 = vcmask 31744  }
 0x40e   : > { %p332_p12 = scmp.lt.s32.totalorder %s1331_s28, 1 }
 0x410   : > { %s1670_s28 = smov (!%p332_p12, %s1331_s28), 1 }
 0x411   : > { %s940_s29 = sshll.u32 %s1670_s28, 3 }
 0x412   : > { %s335_s13 = scalar_lea.vmem %s1654_s7, %s940_s29 }
 0x482   : > { %v783_v48 = vpop.f32.mrf.mxu1 }
 0x488   : > { %v770_v49 = vpop.f32.mrf.mxu0 }
 0x489   : > { %v784_v50 = vadd.f32 %v783_v48, %v770_v49 }
 0x48a   : > { %v785_v51 = vpop.f32.mrf.mxu1 }
 0x48b   : > { %788 = vst.msk [vmem:[%s335_s13] sm:$0xff] %vm787_vm0, %v784_v50 }
 0x490   : > { %v772_v52 = vpop.f32.mrf.mxu0 }
 0x491 PF: > { %s823_s1 = sand.u32 1, %s1254_s24   ;;  %p1664_p3 = scmp.ge.s32.totalorder %s1266_s27, 2 }
 0x492   : > { %s824_s28 = scalar_lea.sflag [#allocation4], %s823_s1 }
 0x493   : > { %p1060_p13 = pnand %p1664_p3, %p1345_p6 }
 0x495   : > { %p1061_p0 = pneg %p1060_p13 }
 0x497   : > { %1249 = dma.done.wait (%p1061_p0), %s824_s28, 128  }
 0x498   : > { %1251 = vsyncadd (%p1061_p0), %s824_s28, 4294967168  ;;  %p23_p5 = scmp.ge.s32.totalorder %s1366_s19, 4   ;;  %s1665_s24 = smov %s1258_s25 }
 0x499   : > { %s1666_s25 = smov %s1262_s26  ;;  %s1667_s26 = smov %s1382_s23 }
 0x49a   : > { %s1668_s27 = smov %s1366_s19  ;;  %25 = sbr.rel (!%p23_p5) target bundleno = 10 (0xa), region = 110 }
 0x49f   :  { %837 = vsyncpa [#allocation3], 1 }
 0x4a0   :  { %839 = vsyncpa [#allocation3 + $0x1], 1 }
 0x4a1   :  { %840 = vsyncpa [#allocation8], 1 }
 0x4a2   :  { %841 = vsyncpa [#allocation4], 1 }
 0x4a3   :  { %843 = vsyncpa [#allocation4 + $0x1], 1 }
 0x4a4   :  { %844 = vsyncpa [#allocation5], 1 }
 0x4a5   :  { %846 = vsyncpa [#allocation5 + $0x1], 1 }

</bundles_post_ra>
